<compile_context>
chip_gen: v7x
topology: tpu7x:2x2x1
jax: 0.10.0
libtpu: 0.0.40
codegen_flags: <defaults>
</compile_context>

<pallas_src>
import jax
import jax.numpy as jnp
import numpy as np
from jax.experimental import pallas as pl
from jax.experimental.pallas import tpu as pltpu  # noqa: F401  (TPU backend / params)


# --------------------------------------------------------------------------- kernel
def decoder_rec_kernel(x_ref, h_ref, wih0_ref, wihl_ref, whh_ref, bi_ref, bhn_ref,
                       wd_ref, bd_ref, o_ref, hidden_ref):
    """Fused single-step multi-layer (bi)GRU + dense head.

    x_ref     : (B, input_dim)              f32  step input
    h_ref     : (L*ND, B, H)                f32  previous hidden, PyTorch layout
    wih0_ref  : (input_dim, ND*3H)          bf16 layer-0 input->gate weights
                                                 (cols = [dir][r|z|n][H], transposed)
    wihl_ref  : (max(L-1,1), ND, H, ND*3H)  bf16 layer>0 input->gate weights, split
                                                 by source direction (split-K)
    whh_ref   : (L, ND, H, 3H)              bf16 hidden->gate weights (per direction,
                                                 no block-diag zeros)
    bi_ref    : (L, 1, ND*3H)               f32  input biases; r/z slots hold
                                                 b_ih+b_hh folded, n slot holds b_in
    bhn_ref   : (L, ND, 1, H)               f32  b_hn (stays inside r*(...) term)
    wd_ref    : (ND, H, input_dim)          bf16 dense weight, split per direction
    bd_ref    : (1, input_dim)              f32  dense bias
    o_ref     : (B, input_dim)              f32  dense(last layer output)
    hidden_ref: (L*ND, B, H)                f32  new hidden (PyTorch layout),
                                                 aliased to h_ref's buffer
    """
    num_layers, num_dir, H, _ = whh_ref.shape
    bf16 = jnp.bfloat16

    # Per-direction layer inputs, already cast to bf16 for the MXU.
    src = [x_ref[...].astype(bf16)]                       # layer 0: just x_t
    for layer in range(num_layers):                        # static unroll (VMEM resident)
        # ---- input -> all gates, both directions: one wide matmul per source chunk.
        if layer == 0:
            gi = jnp.dot(src[0], wih0_ref[...], preferred_element_type=jnp.float32)
        else:
            gi = jnp.dot(src[0], wihl_ref[layer - 1, 0],
                         preferred_element_type=jnp.float32)
            for s in range(1, num_dir):                    # split-K over source dirs
                gi = gi + jnp.dot(src[s], wihl_ref[layer - 1, s],
                                  preferred_element_type=jnp.float32)
        gi = gi + bi_ref[layer]                            # (B, ND*3H) f32

        new_src = []
        for d in range(num_dir):
            h_prev = h_ref[layer * num_dir + d]            # (B, H) f32
            # hidden -> all three gates of this direction in one matmul.
            gh = jnp.dot(h_prev.astype(bf16), whh_ref[layer, d],
                         preferred_element_type=jnp.float32)          # (B, 3H)
            gi_d = gi[:, d * 3 * H:(d + 1) * 3 * H]
            r = jax.nn.sigmoid(gi_d[:, 0:H] + gh[:, 0:H])
            z = jax.nn.sigmoid(gi_d[:, H:2 * H] + gh[:, H:2 * H])
            n = jnp.tanh(gi_d[:, 2 * H:3 * H]
                         + r * (gh[:, 2 * H:3 * H] + bhn_ref[layer, d]))
            h_new = (1.0 - z) * n + z * h_prev             # (B, H) f32
            hidden_ref[layer * num_dir + d] = h_new        # PyTorch layout, in place
            new_src.append(h_new.astype(bf16))
        src = new_src

    # Dense head: o = [h_fwd | h_bwd] @ W_d.T + b_d, split-K per direction (no concat).
    # NOTE: o last dim (=input_dim) is < 128 lanes -> masked store; negligible here.
    o = jnp.dot(src[0], wd_ref[0], preferred_element_type=jnp.float32)
    for s in range(1, num_dir):
        o = o + jnp.dot(src[s], wd_ref[s], preferred_element_type=jnp.float32)
    o_ref[...] = o + bd_ref[...]


# --------------------------------------------------------------------------- wrapper
@jax.jit
def decoder_rec_forward(x_t, h_t, params):
    """Equivalent of DecoderRec.forward(x_t, h_t) -> (o_t, hidden)."""
    wih0, wihl, whh, bi, bhn, wd, bd = params
    num_layers, num_dir, hidden_dim, _ = whh.shape
    batch, input_dim = x_t.shape

    o_t, hidden = pl.pallas_call(
        decoder_rec_kernel,
        out_shape=(
            jax.ShapeDtypeStruct((batch, input_dim), jnp.float32),
            jax.ShapeDtypeStruct((num_layers * num_dir, batch, hidden_dim),
                                 jnp.float32),
        ),
        # h_t (input index 1) aliases the hidden output (output index 1): same
        # PyTorch layout end-to-end, no wrapper transposes, in-place state update.
        # (Callers in a decode loop should also donate h_t at the jit boundary to
        #  make the alias fully copy-free.)
        input_output_aliases={1: 1},
    )(x_t, h_t, wih0, wihl, whh, bi, bhn, wd, bd)
    return o_t, hidden


# --------------------------------------------------------------------------- params
def make_decoder_params(key, input_dim, hidden_dim, num_layers, num_dir):
    """PyTorch-style U(-k, k) init; returns (packed_params, raw_params_for_reference).

    Packing: weights stored transposed so matmuls are x @ W; input->gate weights are
    gate+direction fused along the output axis (cols = [dir][r|z|n][H]); hidden->gate
    weights kept per direction (H, 3H) (no block-diag zeros).  Weights are rounded
    through bf16 and stored as bf16; the SAME rounded values are handed to the numpy
    reference so the test tolerance only has to absorb in-kernel activation casts.
    """
    H = hidden_dim
    D = num_dir * H
    G = num_dir * 3 * H
    k = 1.0 / float(np.sqrt(H))

    def bf16_round(a):
        return np.asarray(jnp.asarray(a, jnp.bfloat16).astype(jnp.float32))

    wih0 = np.zeros((input_dim, G), np.float32)
    wihl = np.zeros((max(num_layers - 1, 1), num_dir, H, G), np.float32)
    whh = np.zeros((num_layers, num_dir, H, 3 * H), np.float32)
    bi = np.zeros((num_layers, 1, G), np.float32)
    bhn = np.zeros((num_layers, num_dir, 1, H), np.float32)

    gru_raw = []
    for layer in range(num_layers):
        in_l = input_dim if layer == 0 else D
        layer_raw = []
        for d in range(num_dir):
            key, k0, k1, k2, k3 = jax.random.split(key, 5)
            W_ih = bf16_round(jax.random.uniform(k0, (3 * H, in_l), jnp.float32, -k, k))
            W_hh = bf16_round(jax.random.uniform(k1, (3 * H, H), jnp.float32, -k, k))
            b_ih = np.asarray(jax.random.uniform(k2, (3 * H,), jnp.float32, -k, k))
            b_hh = np.asarray(jax.random.uniform(k3, (3 * H,), jnp.float32, -k, k))
            layer_raw.append((W_ih, W_hh, b_ih, b_hh))
            for g in range(3):                       # 0=r, 1=z, 2=n (PyTorch order)
                col0 = d * 3 * H + g * H
                gw = W_ih[g * H:(g + 1) * H, :]      # (H, in_l)
                if layer == 0:
                    wih0[:, col0:col0 + H] = gw.T
                else:
                    for s in range(num_dir):         # split by source direction
                        wihl[layer - 1, s, :, col0:col0 + H] = gw[:, s * H:(s + 1) * H].T
                whh[layer, d, :, g * H:(g + 1) * H] = W_hh[g * H:(g + 1) * H, :].T
                if g < 2:                            # fold b_ih + b_hh for r, z
                    bi[layer, 0, col0:col0 + H] = (b_ih[g * H:(g + 1) * H]
                                                   + b_hh[g * H:(g + 1) * H])
                else:                                # n: keep b_hn separate
                    bi[layer, 0, col0:col0 + H] = b_ih[g * H:(g + 1) * H]
                    bhn[layer, d, 0, :] = b_hh[g * H:(g + 1) * H]
        gru_raw.append(layer_raw)

    kd = 1.0 / float(np.sqrt(D))
    key, kw, kb = jax.random.split(key, 3)
    W_dense = bf16_round(jax.random.uniform(kw, (input_dim, D), jnp.float32, -kd, kd))
    b_dense = np.asarray(jax.random.uniform(kb, (input_dim,), jnp.float32, -kd, kd))

    wd = np.zeros((num_dir, H, input_dim), np.float32)
    for s in range(num_dir):
        wd[s] = W_dense[:, s * H:(s + 1) * H].T

    packed = (
        jnp.asarray(wih0, jnp.bfloat16),
        jnp.asarray(wihl, jnp.bfloat16),
        jnp.asarray(whh, jnp.bfloat16),
        jnp.asarray(bi, jnp.float32),
        jnp.asarray(bhn, jnp.float32),
        jnp.asarray(wd, jnp.bfloat16),
        jnp.asarray(b_dense[None, :].copy(), jnp.float32),
    )
    return packed, (gru_raw, (W_dense, b_dense))


# --------------------------------------------------------------------------- reference
def _sigmoid(x):
    return 1.0 / (1.0 + np.exp(-x))


def reference_forward(x_t, h_t, gru_raw, dense_raw):
    """Pure-numpy replica of nn.GRU(seq_len=1, bidirectional) + Linear, eval mode."""
    W_d, b_d = dense_raw
    num_layers = len(gru_raw)
    num_dir = len(gru_raw[0])
    H = gru_raw[0][0][1].shape[1]
    u = x_t.astype(np.float32)
    hn = []
    for layer in range(num_layers):
        outs = []
        for d in range(num_dir):
            W_ih, W_hh, b_ih, b_hh = gru_raw[layer][d]
            h0 = h_t[layer * num_dir + d]
            gi = u @ W_ih.T + b_ih
            gh = h0 @ W_hh.T + b_hh
            r = _sigmoid(gi[:, :H] + gh[:, :H])
            z = _sigmoid(gi[:, H:2 * H] + gh[:, H:2 * H])
            n = np.tanh(gi[:, 2 * H:] + r * gh[:, 2 * H:])
            h_new = (1.0 - z) * n + z * h0
            outs.append(h_new)
            hn.append(h_new)
        u = np.concatenate(outs, axis=1)
    o = u @ W_d.T + b_d
    return o.astype(np.float32), np.stack(hn, axis=0).astype(np.float32)


# --------------------------------------------------------------------------- main
if __name__ == "__main__":
    INPUT_DIM = 4
    HIDDEN_DIM = 32
    NUM_LAYERS = 2
    IS_BIDIRECTIONAL = True
    NUM_DIR = 2 if IS_BIDIRECTIONAL else 1
    BATCH = 2

    key = jax.random.PRNGKey(0)
    key, kx, kh, kp = jax.random.split(key, 4)
    x_t = jax.random.normal(kx, (BATCH, INPUT_DIM), jnp.float32)
    h_t = jax.random.normal(kh, (NUM_LAYERS * NUM_DIR, BATCH, HIDDEN_DIM), jnp.float32)

    packed_params, (gru_raw, dense_raw) = make_decoder_params(
        kp, INPUT_DIM, HIDDEN_DIM, NUM_LAYERS, NUM_DIR)

    # Snapshot inputs for the reference before the (aliased) kernel consumes h_t.
    x_np, h_np = np.asarray(x_t), np.asarray(h_t)

    o_t, hidden = decoder_rec_forward(x_t, h_t, packed_params)
    o_t, hidden = jax.block_until_ready((o_t, hidden))

    assert o_t.shape == (BATCH, INPUT_DIM), o_t.shape
    assert hidden.shape == (NUM_LAYERS * NUM_DIR, BATCH, HIDDEN_DIM), hidden.shape
    assert bool(jnp.all(jnp.isfinite(o_t))) and bool(jnp.all(jnp.isfinite(hidden)))

    # Reference uses the same bf16-rounded weights in f32 math, so the tolerance only
    # covers the in-kernel bf16 activation casts (tight enough to catch any
    # gate-order / direction-packing mistake, which would be O(0.1-1)).
    o_ref_np, hid_ref_np = reference_forward(x_np, h_np, gru_raw, dense_raw)
    np.testing.assert_allclose(np.asarray(o_t), o_ref_np, rtol=2e-2, atol=3e-2)
    np.testing.assert_allclose(np.asarray(hidden), hid_ref_np, rtol=2e-2, atol=3e-2)

    print("KERNEL_OK")
</pallas_src>

<mosaic_0001>
module attributes {stable_mosaic.version = 11 : i64} {
  func.func @decoder_rec_kernel(%arg0: memref<2x4xf32, #tpu.memory_space<vmem>>, %arg1: memref<4x2x32xf32, #tpu.memory_space<vmem>>, %arg2: memref<4x192xbf16, #tpu.memory_space<vmem>>, %arg3: memref<1x2x32x192xbf16, #tpu.memory_space<vmem>>, %arg4: memref<2x2x32x96xbf16, #tpu.memory_space<vmem>>, %arg5: memref<2x1x192xf32, #tpu.memory_space<vmem>>, %arg6: memref<2x2x1x32xf32, #tpu.memory_space<vmem>>, %arg7: memref<2x32x4xbf16, #tpu.memory_space<vmem>>, %arg8: memref<1x4xf32, #tpu.memory_space<vmem>>, %arg9: memref<2x4xf32, #tpu.memory_space<vmem>>, %arg10: memref<4x2x32xf32, #tpu.memory_space<vmem>>) attributes {dimension_semantics = [], scalar_prefetch = 0 : i64, scratch_operands = 0 : i64, tpu.core_type = #tpu.core_type<tc>} {
    %c0 = arith.constant 0 : index
    %c0_0 = arith.constant 0 : index
    %0 = vector.load %arg0[%c0, %c0_0] : memref<2x4xf32, #tpu.memory_space<vmem>>, vector<2x4xf32>
    %1 = arith.truncf %0 : vector<2x4xf32> to vector<2x4xbf16>
    %c0_1 = arith.constant 0 : index
    %c0_2 = arith.constant 0 : index
    %2 = vector.load %arg2[%c0_1, %c0_2] : memref<4x192xbf16, #tpu.memory_space<vmem>>, vector<4x192xbf16>
    %cst = arith.constant dense<0.000000e+00> : vector<2x192xf32>
    %3 = tpu.matmul %1, %2, %cst {dimension_numbers = #tpu.dot_dimension_numbers<[1], [0], [0], [1], [0, 0, 1, 1], [], []>} : vector<2x4xbf16>, vector<4x192xbf16>, vector<2x192xf32> -> vector<2x192xf32>
    %c0_3 = arith.constant 0 : index
    %c0_4 = arith.constant 0 : index
    %c0_5 = arith.constant 0 : index
    %4 = vector.load %arg5[%c0_3, %c0_4, %c0_5] : memref<2x1x192xf32, #tpu.memory_space<vmem>>, vector<1x1x192xf32>
    %5 = vector.shape_cast %4 : vector<1x1x192xf32> to vector<1x192xf32>
    %6 = vector.broadcast %5 : vector<1x192xf32> to vector<2x192xf32>
    %7 = arith.addf %3, %6 : vector<2x192xf32>
    %c0_6 = arith.constant 0 : index
    %c0_7 = arith.constant 0 : index
    %c0_8 = arith.constant 0 : index
    %8 = vector.load %arg1[%c0_6, %c0_7, %c0_8] : memref<4x2x32xf32, #tpu.memory_space<vmem>>, vector<1x2x32xf32>
    %9 = vector.shape_cast %8 : vector<1x2x32xf32> to vector<2x32xf32>
    %10 = arith.truncf %9 : vector<2x32xf32> to vector<2x32xbf16>
    %c0_9 = arith.constant 0 : index
    %c0_10 = arith.constant 0 : index
    %c0_11 = arith.constant 0 : index
    %c0_12 = arith.constant 0 : index
    %11 = vector.load %arg4[%c0_9, %c0_10, %c0_11, %c0_12] : memref<2x2x32x96xbf16, #tpu.memory_space<vmem>>, vector<1x1x32x96xbf16>
    %12 = vector.shape_cast %11 : vector<1x1x32x96xbf16> to vector<32x96xbf16>
    %cst_13 = arith.constant dense<0.000000e+00> : vector<2x96xf32>
    %13 = tpu.matmul %10, %12, %cst_13 {dimension_numbers = #tpu.dot_dimension_numbers<[1], [0], [0], [1], [0, 0, 1, 1], [], []>} : vector<2x32xbf16>, vector<32x96xbf16>, vector<2x96xf32> -> vector<2x96xf32>
    %14 = vector.extract_strided_slice %7 {offsets = [0, 0], sizes = [2, 96], strides = [1, 1]} : vector<2x192xf32> to vector<2x96xf32>
    %15 = vector.extract_strided_slice %14 {offsets = [0, 0], sizes = [2, 32], strides = [1, 1]} : vector<2x96xf32> to vector<2x32xf32>
    %16 = vector.extract_strided_slice %13 {offsets = [0, 0], sizes = [2, 32], strides = [1, 1]} : vector<2x96xf32> to vector<2x32xf32>
    %17 = arith.addf %15, %16 : vector<2x32xf32>
    %18 = arith.negf %17 : vector<2x32xf32>
    %19 = math.exp %18 : vector<2x32xf32>
    %cst_14 = arith.constant 1.000000e+00 : f32
    %20 = vector.broadcast %cst_14 : f32 to vector<2x32xf32>
    %21 = arith.addf %20, %19 : vector<2x32xf32>
    %22 = arith.divf %20, %21 : vector<2x32xf32>
    %23 = vector.extract_strided_slice %14 {offsets = [0, 32], sizes = [2, 32], strides = [1, 1]} : vector<2x96xf32> to vector<2x32xf32>
    %24 = vector.extract_strided_slice %13 {offsets = [0, 32], sizes = [2, 32], strides = [1, 1]} : vector<2x96xf32> to vector<2x32xf32>
    %25 = arith.addf %23, %24 : vector<2x32xf32>
    %26 = arith.negf %25 : vector<2x32xf32>
    %27 = math.exp %26 : vector<2x32xf32>
    %cst_15 = arith.constant 1.000000e+00 : f32
    %28 = vector.broadcast %cst_15 : f32 to vector<2x32xf32>
    %29 = arith.addf %28, %27 : vector<2x32xf32>
    %30 = arith.divf %28, %29 : vector<2x32xf32>
    %31 = vector.extract_strided_slice %14 {offsets = [0, 64], sizes = [2, 32], strides = [1, 1]} : vector<2x96xf32> to vector<2x32xf32>
    %32 = vector.extract_strided_slice %13 {offsets = [0, 64], sizes = [2, 32], strides = [1, 1]} : vector<2x96xf32> to vector<2x32xf32>
    %c0_16 = arith.constant 0 : index
    %c0_17 = arith.constant 0 : index
    %c0_18 = arith.constant 0 : index
    %c0_19 = arith.constant 0 : index
    %33 = vector.load %arg6[%c0_16, %c0_17, %c0_18, %c0_19] : memref<2x2x1x32xf32, #tpu.memory_space<vmem>>, vector<1x1x1x32xf32>
    %34 = vector.shape_cast %33 : vector<1x1x1x32xf32> to vector<1x32xf32>
    %35 = vector.broadcast %34 : vector<1x32xf32> to vector<2x32xf32>
    %36 = arith.addf %32, %35 : vector<2x32xf32>
    %37 = arith.mulf %22, %36 : vector<2x32xf32>
    %38 = arith.addf %31, %37 : vector<2x32xf32>
    %39 = math.tanh %38 : vector<2x32xf32>
    %cst_20 = arith.constant 1.000000e+00 : f32
    %40 = vector.broadcast %cst_20 : f32 to vector<2x32xf32>
    %41 = arith.subf %40, %30 : vector<2x32xf32>
    %42 = arith.mulf %41, %39 : vector<2x32xf32>
    %43 = arith.mulf %30, %9 : vector<2x32xf32>
    %44 = arith.addf %42, %43 : vector<2x32xf32>
    %c0_21 = arith.constant 0 : index
    %c0_22 = arith.constant 0 : index
    %c0_23 = arith.constant 0 : index
    %45 = vector.load %arg10[%c0_21, %c0_22, %c0_23] : memref<4x2x32xf32, #tpu.memory_space<vmem>>, vector<1x2x32xf32>
    %46 = vector.shape_cast %45 : vector<1x2x32xf32> to vector<2x32xf32>
    %47 = vector.shape_cast %44 : vector<2x32xf32> to vector<1x2x32xf32>
    tpu.vector_store %arg10[%c0_21, %c0_22, %c0_23], %47 {strides = array<i32>} : memref<4x2x32xf32, #tpu.memory_space<vmem>>, vector<1x2x32xf32>,
    %48 = arith.truncf %44 : vector<2x32xf32> to vector<2x32xbf16>
    %c1 = arith.constant 1 : index
    %c0_24 = arith.constant 0 : index
    %c0_25 = arith.constant 0 : index
    %49 = vector.load %arg1[%c1, %c0_24, %c0_25] : memref<4x2x32xf32, #tpu.memory_space<vmem>>, vector<1x2x32xf32>
    %50 = vector.shape_cast %49 : vector<1x2x32xf32> to vector<2x32xf32>
    %51 = arith.truncf %50 : vector<2x32xf32> to vector<2x32xbf16>
    %c0_26 = arith.constant 0 : index
    %c1_27 = arith.constant 1 : index
    %c0_28 = arith.constant 0 : index
    %c0_29 = arith.constant 0 : index
    %52 = vector.load %arg4[%c0_26, %c1_27, %c0_28, %c0_29] : memref<2x2x32x96xbf16, #tpu.memory_space<vmem>>, vector<1x1x32x96xbf16>
    %53 = vector.shape_cast %52 : vector<1x1x32x96xbf16> to vector<32x96xbf16>
    %cst_30 = arith.constant dense<0.000000e+00> : vector<2x96xf32>
    %54 = tpu.matmul %51, %53, %cst_30 {dimension_numbers = #tpu.dot_dimension_numbers<[1], [0], [0], [1], [0, 0, 1, 1], [], []>} : vector<2x32xbf16>, vector<32x96xbf16>, vector<2x96xf32> -> vector<2x96xf32>
    %55 = vector.extract_strided_slice %7 {offsets = [0, 96], sizes = [2, 96], strides = [1, 1]} : vector<2x192xf32> to vector<2x96xf32>
    %56 = vector.extract_strided_slice %55 {offsets = [0, 0], sizes = [2, 32], strides = [1, 1]} : vector<2x96xf32> to vector<2x32xf32>
    %57 = vector.extract_strided_slice %54 {offsets = [0, 0], sizes = [2, 32], strides = [1, 1]} : vector<2x96xf32> to vector<2x32xf32>
    %58 = arith.addf %56, %57 : vector<2x32xf32>
    %59 = arith.negf %58 : vector<2x32xf32>
    %60 = math.exp %59 : vector<2x32xf32>
    %cst_31 = arith.constant 1.000000e+00 : f32
    %61 = vector.broadcast %cst_31 : f32 to vector<2x32xf32>
    %62 = arith.addf %61, %60 : vector<2x32xf32>
    %63 = arith.divf %61, %62 : vector<2x32xf32>
    %64 = vector.extract_strided_slice %55 {offsets = [0, 32], sizes = [2, 32], strides = [1, 1]} : vector<2x96xf32> to vector<2x32xf32>
    %65 = vector.extract_strided_slice %54 {offsets = [0, 32], sizes = [2, 32], strides = [1, 1]} : vector<2x96xf32> to vector<2x32xf32>
    %66 = arith.addf %64, %65 : vector<2x32xf32>
    %67 = arith.negf %66 : vector<2x32xf32>
    %68 = math.exp %67 : vector<2x32xf32>
    %cst_32 = arith.constant 1.000000e+00 : f32
    %69 = vector.broadcast %cst_32 : f32 to vector<2x32xf32>
    %70 = arith.addf %69, %68 : vector<2x32xf32>
    %71 = arith.divf %69, %70 : vector<2x32xf32>
    %72 = vector.extract_strided_slice %55 {offsets = [0, 64], sizes = [2, 32], strides = [1, 1]} : vector<2x96xf32> to vector<2x32xf32>
    %73 = vector.extract_strided_slice %54 {offsets = [0, 64], sizes = [2, 32], strides = [1, 1]} : vector<2x96xf32> to vector<2x32xf32>
    %c0_33 = arith.constant 0 : index
    %c1_34 = arith.constant 1 : index
    %c0_35 = arith.constant 0 : index
    %c0_36 = arith.constant 0 : index
    %74 = vector.load %arg6[%c0_33, %c1_34, %c0_35, %c0_36] : memref<2x2x1x32xf32, #tpu.memory_space<vmem>>, vector<1x1x1x32xf32>
    %75 = vector.shape_cast %74 : vector<1x1x1x32xf32> to vector<1x32xf32>
    %76 = vector.broadcast %75 : vector<1x32xf32> to vector<2x32xf32>
    %77 = arith.addf %73, %76 : vector<2x32xf32>
    %78 = arith.mulf %63, %77 : vector<2x32xf32>
    %79 = arith.addf %72, %78 : vector<2x32xf32>
    %80 = math.tanh %79 : vector<2x32xf32>
    %cst_37 = arith.constant 1.000000e+00 : f32
    %81 = vector.broadcast %cst_37 : f32 to vector<2x32xf32>
    %82 = arith.subf %81, %71 : vector<2x32xf32>
    %83 = arith.mulf %82, %80 : vector<2x32xf32>
    %84 = arith.mulf %71, %50 : vector<2x32xf32>
    %85 = arith.addf %83, %84 : vector<2x32xf32>
    %c1_38 = arith.constant 1 : index
    %c0_39 = arith.constant 0 : index
    %c0_40 = arith.constant 0 : index
    %86 = vector.load %arg10[%c1_38, %c0_39, %c0_40] : memref<4x2x32xf32, #tpu.memory_space<vmem>>, vector<1x2x32xf32>
    %87 = vector.shape_cast %86 : vector<1x2x32xf32> to vector<2x32xf32>
    %88 = vector.shape_cast %85 : vector<2x32xf32> to vector<1x2x32xf32>
    tpu.vector_store %arg10[%c1_38, %c0_39, %c0_40], %88 {strides = array<i32>} : memref<4x2x32xf32, #tpu.memory_space<vmem>>, vector<1x2x32xf32>,
    %89 = arith.truncf %85 : vector<2x32xf32> to vector<2x32xbf16>
    %c0_41 = arith.constant 0 : index
    %c0_42 = arith.constant 0 : index
    %c0_43 = arith.constant 0 : index
    %c0_44 = arith.constant 0 : index
    %90 = vector.load %arg3[%c0_41, %c0_42, %c0_43, %c0_44] : memref<1x2x32x192xbf16, #tpu.memory_space<vmem>>, vector<1x1x32x192xbf16>
    %91 = vector.shape_cast %90 : vector<1x1x32x192xbf16> to vector<32x192xbf16>
    %cst_45 = arith.constant dense<0.000000e+00> : vector<2x192xf32>
    %92 = tpu.matmul %48, %91, %cst_45 {dimension_numbers = #tpu.dot_dimension_numbers<[1], [0], [0], [1], [0, 0, 1, 1], [], []>} : vector<2x32xbf16>, vector<32x192xbf16>, vector<2x192xf32> -> vector<2x192xf32>
    %c0_46 = arith.constant 0 : index
    %c1_47 = arith.constant 1 : index
    %c0_48 = arith.constant 0 : index
    %c0_49 = arith.constant 0 : index
    %93 = vector.load %arg3[%c0_46, %c1_47, %c0_48, %c0_49] : memref<1x2x32x192xbf16, #tpu.memory_space<vmem>>, vector<1x1x32x192xbf16>
    %94 = vector.shape_cast %93 : vector<1x1x32x192xbf16> to vector<32x192xbf16>
    %cst_50 = arith.constant dense<0.000000e+00> : vector<2x192xf32>
    %95 = tpu.matmul %89, %94, %cst_50 {dimension_numbers = #tpu.dot_dimension_numbers<[1], [0], [0], [1], [0, 0, 1, 1], [], []>} : vector<2x32xbf16>, vector<32x192xbf16>, vector<2x192xf32> -> vector<2x192xf32>
    %96 = arith.addf %92, %95 : vector<2x192xf32>
    %c1_51 = arith.constant 1 : index
    %c0_52 = arith.constant 0 : index
    %c0_53 = arith.constant 0 : index
    %97 = vector.load %arg5[%c1_51, %c0_52, %c0_53] : memref<2x1x192xf32, #tpu.memory_space<vmem>>, vector<1x1x192xf32>
    %98 = vector.shape_cast %97 : vector<1x1x192xf32> to vector<1x192xf32>
    %99 = vector.broadcast %98 : vector<1x192xf32> to vector<2x192xf32>
    %100 = arith.addf %96, %99 : vector<2x192xf32>
    %c2 = arith.constant 2 : index
    %c0_54 = arith.constant 0 : index
    %c0_55 = arith.constant 0 : index
    %101 = vector.load %arg1[%c2, %c0_54, %c0_55] : memref<4x2x32xf32, #tpu.memory_space<vmem>>, vector<1x2x32xf32>
    %102 = vector.shape_cast %101 : vector<1x2x32xf32> to vector<2x32xf32>
    %103 = arith.truncf %102 : vector<2x32xf32> to vector<2x32xbf16>
    %c1_56 = arith.constant 1 : index
    %c0_57 = arith.constant 0 : index
    %c0_58 = arith.constant 0 : index
    %c0_59 = arith.constant 0 : index
    %104 = vector.load %arg4[%c1_56, %c0_57, %c0_58, %c0_59] : memref<2x2x32x96xbf16, #tpu.memory_space<vmem>>, vector<1x1x32x96xbf16>
    %105 = vector.shape_cast %104 : vector<1x1x32x96xbf16> to vector<32x96xbf16>
    %cst_60 = arith.constant dense<0.000000e+00> : vector<2x96xf32>
    %106 = tpu.matmul %103, %105, %cst_60 {dimension_numbers = #tpu.dot_dimension_numbers<[1], [0], [0], [1], [0, 0, 1, 1], [], []>} : vector<2x32xbf16>, vector<32x96xbf16>, vector<2x96xf32> -> vector<2x96xf32>
    %107 = vector.extract_strided_slice %100 {offsets = [0, 0], sizes = [2, 96], strides = [1, 1]} : vector<2x192xf32> to vector<2x96xf32>
    %108 = vector.extract_strided_slice %107 {offsets = [0, 0], sizes = [2, 32], strides = [1, 1]} : vector<2x96xf32> to vector<2x32xf32>
    %109 = vector.extract_strided_slice %106 {offsets = [0, 0], sizes = [2, 32], strides = [1, 1]} : vector<2x96xf32> to vector<2x32xf32>
    %110 = arith.addf %108, %109 : vector<2x32xf32>
    %111 = arith.negf %110 : vector<2x32xf32>
    %112 = math.exp %111 : vector<2x32xf32>
    %cst_61 = arith.constant 1.000000e+00 : f32
    %113 = vector.broadcast %cst_61 : f32 to vector<2x32xf32>
    %114 = arith.addf %113, %112 : vector<2x32xf32>
    %115 = arith.divf %113, %114 : vector<2x32xf32>
    %116 = vector.extract_strided_slice %107 {offsets = [0, 32], sizes = [2, 32], strides = [1, 1]} : vector<2x96xf32> to vector<2x32xf32>
    %117 = vector.extract_strided_slice %106 {offsets = [0, 32], sizes = [2, 32], strides = [1, 1]} : vector<2x96xf32> to vector<2x32xf32>
    %118 = arith.addf %116, %117 : vector<2x32xf32>
    %119 = arith.negf %118 : vector<2x32xf32>
    %120 = math.exp %119 : vector<2x32xf32>
    %cst_62 = arith.constant 1.000000e+00 : f32
    %121 = vector.broadcast %cst_62 : f32 to vector<2x32xf32>
    %122 = arith.addf %121, %120 : vector<2x32xf32>
    %123 = arith.divf %121, %122 : vector<2x32xf32>
    %124 = vector.extract_strided_slice %107 {offsets = [0, 64], sizes = [2, 32], strides = [1, 1]} : vector<2x96xf32> to vector<2x32xf32>
    %125 = vector.extract_strided_slice %106 {offsets = [0, 64], sizes = [2, 32], strides = [1, 1]} : vector<2x96xf32> to vector<2x32xf32>
    %c1_63 = arith.constant 1 : index
    %c0_64 = arith.constant 0 : index
    %c0_65 = arith.constant 0 : index
    %c0_66 = arith.constant 0 : index
    %126 = vector.load %arg6[%c1_63, %c0_64, %c0_65, %c0_66] : memref<2x2x1x32xf32, #tpu.memory_space<vmem>>, vector<1x1x1x32xf32>
    %127 = vector.shape_cast %126 : vector<1x1x1x32xf32> to vector<1x32xf32>
    %128 = vector.broadcast %127 : vector<1x32xf32> to vector<2x32xf32>
    %129 = arith.addf %125, %128 : vector<2x32xf32>
    %130 = arith.mulf %115, %129 : vector<2x32xf32>
    %131 = arith.addf %124, %130 : vector<2x32xf32>
    %132 = math.tanh %131 : vector<2x32xf32>
    %cst_67 = arith.constant 1.000000e+00 : f32
    %133 = vector.broadcast %cst_67 : f32 to vector<2x32xf32>
    %134 = arith.subf %133, %123 : vector<2x32xf32>
    %135 = arith.mulf %134, %132 : vector<2x32xf32>
    %136 = arith.mulf %123, %102 : vector<2x32xf32>
    %137 = arith.addf %135, %136 : vector<2x32xf32>
    %c2_68 = arith.constant 2 : index
    %c0_69 = arith.constant 0 : index
    %c0_70 = arith.constant 0 : index
    %138 = vector.load %arg10[%c2_68, %c0_69, %c0_70] : memref<4x2x32xf32, #tpu.memory_space<vmem>>, vector<1x2x32xf32>
    %139 = vector.shape_cast %138 : vector<1x2x32xf32> to vector<2x32xf32>
    %140 = vector.shape_cast %137 : vector<2x32xf32> to vector<1x2x32xf32>
    tpu.vector_store %arg10[%c2_68, %c0_69, %c0_70], %140 {strides = array<i32>} : memref<4x2x32xf32, #tpu.memory_space<vmem>>, vector<1x2x32xf32>,
    %141 = arith.truncf %137 : vector<2x32xf32> to vector<2x32xbf16>
    %c3 = arith.constant 3 : index
    %c0_71 = arith.constant 0 : index
    %c0_72 = arith.constant 0 : index
    %142 = vector.load %arg1[%c3, %c0_71, %c0_72] : memref<4x2x32xf32, #tpu.memory_space<vmem>>, vector<1x2x32xf32>
    %143 = vector.shape_cast %142 : vector<1x2x32xf32> to vector<2x32xf32>
    %144 = arith.truncf %143 : vector<2x32xf32> to vector<2x32xbf16>
    %c1_73 = arith.constant 1 : index
    %c1_74 = arith.constant 1 : index
    %c0_75 = arith.constant 0 : index
    %c0_76 = arith.constant 0 : index
    %145 = vector.load %arg4[%c1_73, %c1_74, %c0_75, %c0_76] : memref<2x2x32x96xbf16, #tpu.memory_space<vmem>>, vector<1x1x32x96xbf16>
    %146 = vector.shape_cast %145 : vector<1x1x32x96xbf16> to vector<32x96xbf16>
    %cst_77 = arith.constant dense<0.000000e+00> : vector<2x96xf32>
    %147 = tpu.matmul %144, %146, %cst_77 {dimension_numbers = #tpu.dot_dimension_numbers<[1], [0], [0], [1], [0, 0, 1, 1], [], []>} : vector<2x32xbf16>, vector<32x96xbf16>, vector<2x96xf32> -> vector<2x96xf32>
    %148 = vector.extract_strided_slice %100 {offsets = [0, 96], sizes = [2, 96], strides = [1, 1]} : vector<2x192xf32> to vector<2x96xf32>
    %149 = vector.extract_strided_slice %148 {offsets = [0, 0], sizes = [2, 32], strides = [1, 1]} : vector<2x96xf32> to vector<2x32xf32>
    %150 = vector.extract_strided_slice %147 {offsets = [0, 0], sizes = [2, 32], strides = [1, 1]} : vector<2x96xf32> to vector<2x32xf32>
    %151 = arith.addf %149, %150 : vector<2x32xf32>
    %152 = arith.negf %151 : vector<2x32xf32>
    %153 = math.exp %152 : vector<2x32xf32>
    %cst_78 = arith.constant 1.000000e+00 : f32
    %154 = vector.broadcast %cst_78 : f32 to vector<2x32xf32>
    %155 = arith.addf %154, %153 : vector<2x32xf32>
    %156 = arith.divf %154, %155 : vector<2x32xf32>
    %157 = vector.extract_strided_slice %148 {offsets = [0, 32], sizes = [2, 32], strides = [1, 1]} : vector<2x96xf32> to vector<2x32xf32>
    %158 = vector.extract_strided_slice %147 {offsets = [0, 32], sizes = [2, 32], strides = [1, 1]} : vector<2x96xf32> to vector<2x32xf32>
    %159 = arith.addf %157, %158 : vector<2x32xf32>
    %160 = arith.negf %159 : vector<2x32xf32>
    %161 = math.exp %160 : vector<2x32xf32>
    %cst_79 = arith.constant 1.000000e+00 : f32
    %162 = vector.broadcast %cst_79 : f32 to vector<2x32xf32>
    %163 = arith.addf %162, %161 : vector<2x32xf32>
    %164 = arith.divf %162, %163 : vector<2x32xf32>
    %165 = vector.extract_strided_slice %148 {offsets = [0, 64], sizes = [2, 32], strides = [1, 1]} : vector<2x96xf32> to vector<2x32xf32>
    %166 = vector.extract_strided_slice %147 {offsets = [0, 64], sizes = [2, 32], strides = [1, 1]} : vector<2x96xf32> to vector<2x32xf32>
    %c1_80 = arith.constant 1 : index
    %c1_81 = arith.constant 1 : index
    %c0_82 = arith.constant 0 : index
    %c0_83 = arith.constant 0 : index
    %167 = vector.load %arg6[%c1_80, %c1_81, %c0_82, %c0_83] : memref<2x2x1x32xf32, #tpu.memory_space<vmem>>, vector<1x1x1x32xf32>
    %168 = vector.shape_cast %167 : vector<1x1x1x32xf32> to vector<1x32xf32>
    %169 = vector.broadcast %168 : vector<1x32xf32> to vector<2x32xf32>
    %170 = arith.addf %166, %169 : vector<2x32xf32>
    %171 = arith.mulf %156, %170 : vector<2x32xf32>
    %172 = arith.addf %165, %171 : vector<2x32xf32>
    %173 = math.tanh %172 : vector<2x32xf32>
    %cst_84 = arith.constant 1.000000e+00 : f32
    %174 = vector.broadcast %cst_84 : f32 to vector<2x32xf32>
    %175 = arith.subf %174, %164 : vector<2x32xf32>
    %176 = arith.mulf %175, %173 : vector<2x32xf32>
    %177 = arith.mulf %164, %143 : vector<2x32xf32>
    %178 = arith.addf %176, %177 : vector<2x32xf32>
    %c3_85 = arith.constant 3 : index
    %c0_86 = arith.constant 0 : index
    %c0_87 = arith.constant 0 : index
    %179 = vector.load %arg10[%c3_85, %c0_86, %c0_87] : memref<4x2x32xf32, #tpu.memory_space<vmem>>, vector<1x2x32xf32>
    %180 = vector.shape_cast %179 : vector<1x2x32xf32> to vector<2x32xf32>
    %181 = vector.shape_cast %178 : vector<2x32xf32> to vector<1x2x32xf32>
    tpu.vector_store %arg10[%c3_85, %c0_86, %c0_87], %181 {strides = array<i32>} : memref<4x2x32xf32, #tpu.memory_space<vmem>>, vector<1x2x32xf32>,
    %182 = arith.truncf %178 : vector<2x32xf32> to vector<2x32xbf16>
    %c0_88 = arith.constant 0 : index
    %c0_89 = arith.constant 0 : index
    %c0_90 = arith.constant 0 : index
    %183 = vector.load %arg7[%c0_88, %c0_89, %c0_90] : memref<2x32x4xbf16, #tpu.memory_space<vmem>>, vector<1x32x4xbf16>
    %184 = vector.shape_cast %183 : vector<1x32x4xbf16> to vector<32x4xbf16>
    %cst_91 = arith.constant dense<0.000000e+00> : vector<2x4xf32>
    %185 = tpu.matmul %141, %184, %cst_91 {dimension_numbers = #tpu.dot_dimension_numbers<[1], [0], [0], [1], [0, 0, 1, 1], [], []>} : vector<2x32xbf16>, vector<32x4xbf16>, vector<2x4xf32> -> vector<2x4xf32>
    %c1_92 = arith.constant 1 : index
    %c0_93 = arith.constant 0 : index
    %c0_94 = arith.constant 0 : index
    %186 = vector.load %arg7[%c1_92, %c0_93, %c0_94] : memref<2x32x4xbf16, #tpu.memory_space<vmem>>, vector<1x32x4xbf16>
    %187 = vector.shape_cast %186 : vector<1x32x4xbf16> to vector<32x4xbf16>
    %cst_95 = arith.constant dense<0.000000e+00> : vector<2x4xf32>
    %188 = tpu.matmul %182, %187, %cst_95 {dimension_numbers = #tpu.dot_dimension_numbers<[1], [0], [0], [1], [0, 0, 1, 1], [], []>} : vector<2x32xbf16>, vector<32x4xbf16>, vector<2x4xf32> -> vector<2x4xf32>
    %189 = arith.addf %185, %188 : vector<2x4xf32>
    %c0_96 = arith.constant 0 : index
    %c0_97 = arith.constant 0 : index
    %190 = vector.load %arg8[%c0_96, %c0_97] : memref<1x4xf32, #tpu.memory_space<vmem>>, vector<1x4xf32>
    %191 = vector.broadcast %190 : vector<1x4xf32> to vector<2x4xf32>
    %192 = arith.addf %189, %191 : vector<2x4xf32>
    %c0_98 = arith.constant 0 : index
    %c0_99 = arith.constant 0 : index
    %193 = vector.load %arg9[%c0_98, %c0_99] : memref<2x4xf32, #tpu.memory_space<vmem>>, vector<2x4xf32>
    tpu.vector_store %arg9[%c0_98, %c0_99], %192 {strides = array<i32>} : memref<2x4xf32, #tpu.memory_space<vmem>>, vector<2x4xf32>,
    return
  }
}

</mosaic_0001>

<bundles_post_ra>
// kernel: decoder_rec_forward.1
= control target key start
LH: loop header
LB: loop body
LE: loop exit
PB: predicated region body
PF: predicated region fallthrough
CT: control target
= control target key end

     0   :  { %16 = vsyncpa [#allocation3], 0  ;;  %s1654_s0 = inlined_call_operand.vmem [shape: f32[2,4], index: 0, kind: input, shape index: {}]   ;;  %s1655_s1 = inlined_call_operand.hbm [shape: f32[4,2,32], index: 1, kind: input, shape index: {}, may-alias: {1,10}]   ;;  %s1656_s2 = inlined_call_operand.hbm [shape: bf16[4,192], index: 2, kind: input, shape index: {}]   ;;  %s1657_s3 = inlined_call_operand.vmem [shape: bf16[1,2,32,192], index: 3, kind: input, shape index: {}]   ;;  %s1658_s4 = inlined_call_operand.hbm [shape: bf16[2,2,32,96], index: 4, kind: input, shape index: {}]   ;;  %s1659_s5 = inlined_call_operand.hbm [shape: f32[2,1,192], index: 5, kind: input, shape index: {}]   ;;  %s1660_s6 = inlined_call_operand.hbm [shape: f32[2,2,1,32], index: 6, kind: input, shape index: {}]   ;;  %s1661_s7 = inlined_call_operand.vmem [shape: bf16[2,32,4], index: 7, kind: input, shape index: {}]   ;;  %s1662_s8 = inlined_call_operand.hbm [shape: f32[1,4], index: 8, kind: input, shape index: {}]   ;;  %s1663_s9 = inlined_call_operand.hbm [shape: f32[2,4], index: 9, kind: output, shape index: {0}]   ;;  %s1664_s10 = inlined_call_operand.hbm [shape: f32[4,2,32], index: 10, kind: output, shape index: {1}, may-alias: {1,10}]  }
   0x1   :  { %17 = vsyncpa [#allocation6], 0 }
   0x2   :  { %18 = vsyncpa [#allocation9], 0 }
   0x3   :  { %19 = vsyncpa [#allocation12], 0 }
   0x4   :  { %20 = vsyncpa [#allocation4], 0 }
   0x5   :  { %21 = vsyncpa [#allocation15], 0  ;;  %s1338_s13 = smov [#allocation5]   ;;  %s1150_s17 = scalar_lea.hbm %s1656_s2, 64 }
   0x6   :  { %s42_s14 = sshll.u32 %s1338_s13, 4  ;;  %p1151_p0 = scmp.ne.s32.totalorder %s1656_s2, %s1150_s17  ;;  %s43_s14 = int_to_ptr.vmem [resolvable:$true] %s42_s14 }
   0x7   :  { %p1154_p1 = scmp.lt.u32.totalorder %s1150_s17, %s1656_s2 }
   0x9   :  { %p1156_p2 = pnand %p1154_p1, %p1151_p0 }
   0xb   :  { %1159 = shalt.err (!%p1156_p2)
}
   0xc   :  { %s1160_s22 = scalar_lea.vmem %s43_s14, 64  ;;  %p1165_p4 = scmp.lt.s32.totalorder %s43_s14, %s43_s14 }
   0xd   :  { %p1161_p3 = scmp.ne.s32.totalorder %s43_s14, %s1160_s22  ;;  %p1166_p5 = scmp.lt.s32.totalorder %s1160_s22, %s1160_s22 }
   0xf   :  { %p1167_p6 = por %p1166_p5, %p1165_p4 }
  0x11   :  { %p1168_p7 = pnand %p1167_p6, %p1161_p3 }
  0x13   :  { %1171 = shalt.err (!%p1168_p7)
}
  0x14   :  { %45 = dma.hbm_to_vmem [thread:$0]  %s1656_s2, 64, %s43_s14, [#allocation6]  }
  0x15   :  { %s1339_s25 = smov [#allocation8]   ;;  %s1340_s27 = smov [#allocation2]  }
  0x16   :  { %s65_s26 = sshll.u32 %s1339_s25, 4  ;;  %s29_s28 = sshll.u32 %s1340_s27, 4  ;;  %s66_s26 = int_to_ptr.vmem [resolvable:$true] %s65_s26  ;;  %s30_s28 = int_to_ptr.vmem [resolvable:$true] %s29_s28 }
  0x17   :  { %s1172_s11 = scalar_lea.hbm %s1659_s5, 64 }
  0x18   :  { %p1173_p8 = scmp.ne.s32.totalorder %s1659_s5, %s1172_s11  ;;  %p1176_p9 = scmp.lt.u32.totalorder %s1172_s11, %s1659_s5 }
  0x1a   :  { %p1178_p10 = pnand %p1176_p9, %p1173_p8 }
  0x1c   :  { %1181 = shalt.err (!%p1178_p10)
}
  0x1d   :  { %s1182_s2 = scalar_lea.vmem %s66_s26, 64  ;;  %p1187_p12 = scmp.lt.s32.totalorder %s66_s26, %s66_s26 }
  0x1e   :  { %p1183_p11 = scmp.ne.s32.totalorder %s66_s26, %s1182_s2  ;;  %p1188_p13 = scmp.lt.s32.totalorder %s1182_s2, %s1182_s2 }
  0x20   :  { %p1189_p0 = por %p1188_p13, %p1187_p12 }
  0x22   :  { %p1190_p1 = pnand %p1189_p0, %p1183_p11 }
  0x24   :  { %1193 = shalt.err (!%p1190_p1)
}
  0x25   :  { %s1341_s14 = smov 32   ;;  %s1342_s17 = smov 2  }
  0x26   :  { %71 = dma.hbm_to_vmem [thread:$0]  %s1659_s5, 64, %s66_s26, [#allocation9], %s1341_s14, %s1341_s14, %s1342_s17  }
  0x27   :  { %s1194_s22 = scalar_lea.hbm %s1655_s1, 128 }
  0x28   :  { %p1195_p2 = scmp.ne.s32.totalorder %s1655_s1, %s1194_s22  ;;  %p1198_p3 = scmp.lt.u32.totalorder %s1194_s22, %s1655_s1 }
  0x2a   :  { %p1200_p4 = pnand %p1198_p3, %p1195_p2 }
  0x2c   :  { %1203 = shalt.err (!%p1200_p4)
}
  0x2d   :  { %s1204_s29 = scalar_lea.vmem %s30_s28, 128  ;;  %p1209_p6 = scmp.lt.s32.totalorder %s30_s28, %s30_s28 }
  0x2e   :  { %p1205_p5 = scmp.ne.s32.totalorder %s30_s28, %s1204_s29  ;;  %p1210_p7 = scmp.lt.s32.totalorder %s1204_s29, %s1204_s29 }
  0x30   :  { %p1211_p8 = por %p1210_p7, %p1209_p6 }
  0x32   :  { %p1212_p9 = pnand %p1211_p8, %p1205_p5 }
  0x34   :  { %1215 = shalt.err (!%p1212_p9)
}
  0x35   :  { %35 = dma.hbm_to_vmem [thread:$0]  %s1655_s1, 128, %s30_s28, [#allocation3], %s1341_s14, %s1341_s14, %s1342_s17  }
  0x36   :  { %s1343_s30 = smov [#allocation7]   ;;  %s1216_s15 = scalar_lea.hbm %s1658_s4, 1024 }
  0x37   :  { %s53_s11 = sshll.u32 %s1343_s30, 4  ;;  %p1217_p10 = scmp.ne.s32.totalorder %s1658_s4, %s1216_s15  ;;  %s54_s11 = int_to_ptr.vmem [resolvable:$true] %s53_s11 }
  0x38   :  { %p1220_p11 = scmp.lt.u32.totalorder %s1216_s15, %s1658_s4 }
  0x3a   :  { %p1222_p12 = pnand %p1220_p11, %p1217_p10 }
  0x3c   :  { %1225 = shalt.err (!%p1222_p12)
}
  0x3d   :  { %s1226_s20 = scalar_lea.vmem %s54_s11, 1024  ;;  %p1231_p0 = scmp.lt.s32.totalorder %s54_s11, %s54_s11 }
  0x3e   :  { %p1227_p13 = scmp.ne.s32.totalorder %s54_s11, %s1226_s20  ;;  %p1232_p1 = scmp.lt.s32.totalorder %s1226_s20, %s1226_s20 }
  0x40   :  { %p1233_p2 = por %p1232_p1, %p1231_p0 }
  0x42   :  { %p1234_p3 = pnand %p1233_p2, %p1227_p13 }
  0x44   :  { %1237 = shalt.err (!%p1234_p3)
}
  0x45   :  { %s1344_s1 = smov 64   ;;  %s1345_s28 = smov 4  }
  0x46   :  { %59 = dma.hbm_to_vmem [thread:$0]  %s1658_s4, 1024, %s54_s11, [#allocation6], %s1344_s1, %s1344_s1, %s1345_s28  }
  0x47   :  { %s1346_s23 = smov [#allocation10]   ;;  %s1238_s29 = scalar_lea.hbm %s1660_s6, 64 }
  0x48   :  { %s77_s24 = sshll.u32 %s1346_s23, 4  ;;  %p1239_p4 = scmp.ne.s32.totalorder %s1660_s6, %s1238_s29  ;;  %s78_s24 = int_to_ptr.vmem [resolvable:$true] %s77_s24 }
  0x49   :  { %p1242_p5 = scmp.lt.u32.totalorder %s1238_s29, %s1660_s6 }
  0x4b   :  { %p1244_p6 = pnand %p1242_p5, %p1239_p4 }
  0x4d   :  { %1247 = shalt.err (!%p1244_p6)
}
  0x4e   :  { %s1248_s13 = scalar_lea.vmem %s78_s24, 64  ;;  %p1253_p8 = scmp.lt.s32.totalorder %s78_s24, %s78_s24 }
  0x4f   :  { %p1249_p7 = scmp.ne.s32.totalorder %s78_s24, %s1248_s13  ;;  %p1254_p9 = scmp.lt.s32.totalorder %s1248_s13, %s1248_s13 }
  0x51   :  { %p1255_p10 = por %p1254_p9, %p1253_p8 }
  0x53   :  { %p1256_p11 = pnand %p1255_p10, %p1249_p7 }
  0x55   :  { %1259 = shalt.err (!%p1256_p11)
}
  0x56   :  { %s1347_s4 = smov 16   ;;  %s1348_s11 = smov 1  }
  0x57   :  { %83 = dma.hbm_to_vmem [thread:$0]  %s1660_s6, 64, %s78_s24, [#allocation9], %s1347_s4, %s1347_s4, %s1348_s11  }
  0x58   :  { %s1349_s2 = smov [#allocation11]   ;;  %s1260_s28 = scalar_lea.hbm %s1662_s8, 16 }
  0x59   :  { %s92_s18 = sshll.u32 %s1349_s2, 4  ;;  %p1261_p12 = scmp.ne.s32.totalorder %s1662_s8, %s1260_s28  ;;  %s93_s18 = int_to_ptr.vmem [resolvable:$true] %s92_s18 }
  0x5a   :  { %p1264_p13 = scmp.lt.u32.totalorder %s1260_s28, %s1662_s8 }
  0x5c   :  { %p1266_p0 = pnand %p1264_p13, %p1261_p12 }
  0x5e   :  { %1269 = shalt.err (!%p1266_p0)
}
  0x5f   :  { %s1270_s27 = scalar_lea.vmem %s93_s18, 16  ;;  %s1274_s6 = scalar_lea.vmem %s93_s18, 32 }
  0x60   :  { %p1271_p1 = scmp.ne.s32.totalorder %s93_s18, %s1270_s27  ;;  %p1275_p2 = scmp.lt.s32.totalorder %s93_s18, %s93_s18 }
  0x61   :  { %p1276_p3 = scmp.lt.s32.totalorder %s1274_s6, %s1270_s27 }
  0x63   :  { %p1277_p4 = por %p1276_p3, %p1275_p2 }
  0x65   :  { %p1278_p5 = pnand %p1277_p4, %p1271_p1 }
  0x67   :  { %1281 = shalt.err (!%p1278_p5)
}
  0x68   :  { %95 = dma.hbm_to_vmem [thread:$0]  %s1662_s8, 16, %s93_s18, [#allocation12]  }
  0x69   :  { %1326 = dma.done.wait [#allocation3], 128  }
  0x6a   :  { %1327 = vsyncadd [#allocation3], 4294967168 }
  0x6b   :  { %1328 = dma.done.wait [#allocation6], 1088  }
  0x6c   :  { %1329 = vsyncadd [#allocation6], 4294966208 }
  0x6d   :  { %1330 = dma.done.wait [#allocation9], 128  }
  0x6e   :  { %1331 = vsyncadd [#allocation9], 4294967168 }
  0x6f   :  { %1332 = dma.done.wait [#allocation12], 16  }
  0x70   :  { %1333 = vsyncadd [#allocation12], 4294967280  ;;  %v1350_v0 = vmov 0.0   ;;  %v1351_v1 = vmov 0   ;;  %vm1352_vm0 = vmmov 0   ;;  %vm143_vm1 = vcmask 1041408  }
  0x71   :  { %1028 = vmatprep.subr.bf16.mxu1 %v1350_v0  ;;  %182 = vmatprep.mubr.bf16.mxu0 %v1351_v1  ;;  %v960_v2 = vld.sshfl [vmem:[#allocation5] sm:$0x33 pattern:$0x76325410]  ;;  %v1094_v4 = vld [vmem:[#allocation7] sm:$0xff]   ;;  %v1095_v7 = vld [vmem:[#allocation7 + $0x8] sm:$0xff]   ;;  %v120_v33 = vlaneseq }
  0x72   :  { %1032 = vmatprep.mubr.msk.bf16.mxu1 %vm1352_vm0, %v1350_v0  ;;  %v138_v3 = vcombine.high %v960_v2, %v960_v2  ;;  %v145_v5 = vsel %vm143_vm1, %v960_v2, 0  ;;  %v115_v6 = vld [vmem:[%s1654_s0] sm:$0x3]  ;;  %1029 = vmatpush3.bf16.msra.mxu1 %v1094_v4  ;;  %vm139_vm2 = vcmask 31744   ;;  %v967_v11 = vld [vmem:[#allocation10] ss:$0 sm:$0xff] }
  0x73   :  { %v116_v8 = vpack.c.bf16 %v115_v6, %v115_v6  ;;  %v1096_v9 = vld [vmem:[#allocation7 + $0x10] sm:$0xff]   ;;  %1030 = vmatprep.subr.bf16.mxu1 %v1350_v0  ;;  %v1097_v13 = vld [vmem:[#allocation7 + $0x18] sm:$0xff]   ;;  %266 = vrot.lane.b32.xlu0 %v967_v11, %s1344_s1  ;;  %v973_v15 = vld [vmem:[#allocation10 + $0x1] ss:$0 sm:$0xff]  ;;  %vm209_vm3 = vcmask 261120   ;;  %s1353_s0 = smov 96  }
  0x74   :  { %961 = vmatprep.subr.msk.bf16.mxu0 %vm143_vm1, %v138_v3  ;;  %v1498_v10 = vld [vmem:[#allocation2] sm:$0x3]  ;;  %v1503_v14 = vld [vmem:[#allocation2 + $0x2] sm:$0x3]  ;;  %v1517_v34 = vshrl.u32 %v120_v33, 7  ;;  %vm297_vm4 = vcmask 254976  }
  0x75   :  { %151 = vmatpush1.bf16.msra.mxu0 %v145_v5  ;;  %v192_v12 = vpack.c.bf16 %v1498_v10, %v1498_v10  ;;  %v302_v16 = vpack.c.bf16 %v1503_v14, %v1503_v14  ;;  %v118_v36 = vld [vmem:[#allocation8] sm:$0x3]  ;;  %v1098_v56 = vld [vmem:[%s1657_s3 + $0x20] ss:$8 sps:$4 sm:$0xff]   ;;  %v1101_v2 = vld [vmem:[%s1657_s3 + $0x30] ss:$8 sps:$4 sm:$0xff]  }
  0x76   :  { %1036 = vmatprep.subr.bf16.mxu0 %v1350_v0  ;;  %1031 = vmatpush3.bf16.msra.mxu1 %v1095_v7  ;;  %v122_v35 = vsub.s32 0, %v1517_v34  ;;  %v1100_v57 = vld [vmem:[%s1657_s3 + $0x24] ss:$8 sps:$4 sm:$0xff]   ;;  %v126_v59 = vsub.s32 1, %v1517_v34  ;;  %v1106_v4 = vld [vmem:[%s1657_s3] ss:$8 sps:$4 sm:$0xff]  }
  0x77   :  { %388 = vrot.lane.b32.xlu0 %v973_v15, %s1344_s1  ;;  %446 = vmatprep.subr.bf16.mxu1 %v1100_v57  ;;  %v1108_v5 = vld [vmem:[%s1657_s3 + $0x4] ss:$8 sps:$4 sm:$0xff]   ;;  %v1111_v6 = vld [vmem:[%s1657_s3 + $0x14] ss:$8 sps:$4 sm:$0xff]   ;;  %v1109_v7 = vld [vmem:[%s1657_s3 + $0x10] ss:$8 sps:$4 sm:$0xff]  }
  0x78   :  { %962 = vmatmul.mubr.msk.bf16.vlgmr.msra.gmra.mrb[0].mxu0 %vm139_vm2, %v116_v8  ;;  %v123_v37 = vrot.slane %v118_v36, %v122_v35  ;;  %v127_v60 = vrot.slane %v118_v36, %v126_v59  ;;  %v1113_v36 = vld [vmem:[#allocation7 + $0x38] sm:$0xff]  }
  0x79   :  { %1037 = vmatpush3.bf16.msra.mxu0 %v1096_v9  ;;  %1040 = vmatprep.mubr.msk.bf16.mxu0 %vm1352_vm0, %v1350_v0 }
  0x7a   :  { %1038 = vmatprep.subr.bf16.mxu0 %v1350_v0  ;;  %1033 = vmatmul.mubr.msk.bf16.vlgmr.msra.gmra.mrb[0].mxu1 %vm209_vm3, %v192_v12 }
  0x7b   :  { %478 = vmatprep.mubr.bf16.mxu1 %v1351_v1  ;;  %447 = vmatpush1.bf16.msra.mxu1 %v1098_v56 }
  0x7d   :  { %1039 = vmatpush3.bf16.msra.mxu0 %v1097_v13 }
  0x7e   :  { %513 = vmatprep.subr.bf16.mxu0 %v1108_v5 }
  0x80   :  { %1041 = vmatmul.mubr.msk.bf16.vlgmr.msra.gmra.mrb[4].mxu0 %vm209_vm3, %v302_v16  ;;  %v992_v16 = vld [vmem:[#allocation10 + $0x2] ss:$0 sm:$0xff] }
  0x81   :  { %545 = vmatprep.mubr.bf16.mxu0 %v1351_v1  ;;  %v1103_v1 = vld [vmem:[%s1657_s3 + $0x34] ss:$8 sps:$4 sm:$0xff]   ;;  %514 = vmatpush1.bf16.msra.mxu0 %v1106_v4 }
  0x82   :  { %448 = vmatprep.subr.bf16.mxu1 %v1103_v1  ;;  %515 = vmatprep.subr.bf16.mxu0 %v1111_v6 }
  0x83   :  { %449 = vmatpush1.bf16.msra.mxu1 %v1101_v2 }
  0x84   :  { %1044 = vmatprep.subr.bf16.mxu1 %v1350_v0 }
  0x85   :  { %516 = vmatpush1.bf16.msra.mxu0 %v1109_v7 }
  0x86   :  { %1052 = vmatprep.subr.bf16.mxu0 %v1350_v0 }
  0xe5   :  { %v267_v18 = vpop.permute.xlu0 %266 }
  0xe9   :  { %v389_v25 = vpop.permute.xlu0 %388 }
 0x14b   :  { %v184_v17 = vpop.f32.mrb[0].mxu0 }
 0x14c   :  { %v186_v19 = vpop.f32.mrb[1].mxu0  ;;  %v185_v38 = vadd.f32 %v184_v17, %v123_v37  ;;  %v1581_v37 = vld [vmem:[#allocation2 + $0x6] sm:$0x3] }
 0x14d   :  { %v188_v20 = vpop.f32.mrb[2].mxu0  ;;  %v247_v22 = vpop.f32.mrb[0].mxu1  ;;  %v187_v61 = vadd.f32 %v186_v19, %v127_v60 }
 0x14e   :  { %v189_v21 = vpop.f32.mrb[3].mxu0  ;;  %v1034_v23 = vpop.f32.mrb[1].mxu1  ;;  %v269_v28 = vadd.f32 %v267_v18, %v247_v22  ;;  %v253_v39 = vadd.f32 %v247_v22, %v185_v38 }
 0x14f   :  { %v250_v24 = vpop.f32.mrb[2].mxu1  ;;  %v998_v21 = vld [vmem:[#allocation10 + $0x3] ss:$0 sm:$0xff] }
 0x150   :  { %v1035_v26 = vpop.f32.mrb[3].mxu1  ;;  %v966_v40 = vmul.f32 -1.442695, %v253_v39 }
 0x152   :  { %1118 = vpow2.f32 %v966_v40 }
 0x153   :  { %v357_v27 = vpop.f32.mrb[4].mxu0 }
 0x154   :  { %v391_v29 = vadd.f32 %v389_v25, %v357_v27  ;;  %364 = vrot.lane.b32.xlu1 %v357_v27, %s1353_s0  ;;  %v1042_v30 = vpop.f32.mrb[5].mxu0 }
 0x155   :  { %v360_v31 = vpop.f32.mrb[6].mxu0  ;;  %v1105_v30 = vld [vmem:[#allocation7 + $0x28] sm:$0xff]  }
 0x156   :  { %v1043_v32 = vpop.f32.mrb[7].mxu0  ;;  %393 = vrot.lane.b32.xlu0 %v391_v29, %s1341_s14  ;;  %v1569_v31 = vld [vmem:[#allocation2 + $0x4] sm:$0x3] }
 0x157   :  { %v1112_v32 = vld [vmem:[#allocation7 + $0x30] sm:$0xff]  }
 0x158   :  { %271 = vrot.lane.b32.xlu1 %v269_v28, %s1344_s1  ;;  %v1104_v28 = vld [vmem:[#allocation7 + $0x20] sm:$0xff]  }
 0x15c   :  { %v1119_v41 = vpop.eup %1118 }
 0x15d   :  { %v257_v42 = vadd.f32 1.0, %v1119_v41 }
 0x15f   :  { %1120 = vrcp.f32 %v257_v42 }
 0x169   :  { %v1121_v46 = vpop.eup %1120 }
 0x16a   :  { %v281_v11 = vsub.f32 1.0, %v1121_v46 }
 0x1c6   :  { %v365_v43 = vpop.permute.xlu1 %364 }
 0x1c7   :  { %v367_v44 = vadd.f32 %v365_v43, %v185_v38  ;;  %v374_v8 = vadd.f32 %v365_v43, %v187_v61 }
 0x1c8   :  { %v394_v52 = vpop.permute.xlu0 %393 }
 0x1c9   :  { %v971_v45 = vmul.f32 -1.442695, %v367_v44  ;;  %v972_v9 = vmul.f32 -1.442695, %v374_v8 }
 0x1ca   :  { %v272_v47 = vpop.permute.xlu1 %271 }
 0x1cb   :  { %1122 = vpow2.f32 %v971_v45  ;;  %v274_v48 = vmul.f32 %v1121_v46, %v272_v47 }
 0x1cd   :  { %276 = vrot.lane.b32.xlu1 %v274_v48, %s1344_s1 }
 0x1d5   :  { %v1123_v49 = vpop.eup %1122 }
 0x1d6   :  { %v371_v50 = vadd.f32 1.0, %v1123_v49  ;;  %v555_v49 = vld [vmem:[#allocation8 + $0x2] sm:$0x3] }
 0x1d8   :  { %1124 = vrcp.f32 %v371_v50  ;;  %v560_v50 = vrot.slane %v555_v49, %v122_v35 }
 0x1e2   :  { %v1125_v51 = vpop.eup %1124 }
 0x1e3   :  { %v396_v53 = vmul.f32 %v1125_v51, %v394_v52  ;;  %v564_v52 = vrot.slane %v555_v49, %v126_v59 }
 0x1e5   :  { %398 = vrot.lane.b32.xlu0 %v396_v53, %s1344_s1 }
 0x1e9   :  { %288 = vrot.lane.b32.xlu0 %v1498_v10, %s1341_s14 }
 0x23f   :  { %v277_v54 = vpop.permute.xlu1 %276 }
 0x240   :  { %v279_v55 = vadd.f32 %v277_v54, %v185_v38  ;;  %v682_v38 = vpack.c.bf16 %v1581_v37, %v1581_v37 }
 0x242   :  { %1126 = vtanh.f32 %v279_v55 }
 0x24c   :  { %v1127_v58 = vpop.eup %1126 }
 0x24d   :  { %283 = vrot.lane.b32.xlu1 %v1127_v58, %s1353_s0 }
 0x257   :  { %v399_v62 = vpop.permute.xlu0 %398 }
 0x258   :  { %v401_v63 = vadd.f32 %v399_v62, %v187_v61 }
 0x25a   :  { %1128 = vtanh.f32 %v401_v63 }
 0x25b   :  { %1130 = vpow2.f32 %v972_v9  ;;  %v289_v10 = vpop.permute.xlu0 %288 }
 0x25c   :  { %v291_v13 = vmul.f32 %v1121_v46, %v289_v10 }
 0x264   :  { %v1129_v3 = vpop.eup %1128 }
 0x265   :  { %405 = vrot.lane.b32.xlu1 %v1129_v3, %s1353_s0  ;;  %v1131_v17 = vpop.eup %1130 }
 0x266   :  { %v378_v20 = vadd.f32 1.0, %v1131_v17 }
 0x268   :  { %1132 = vrcp.f32 %v378_v20  ;;  %v1114_v20 = vld [vmem:[%s1661_s7] sm:$0xff]  }
 0x269   :  { %646 = vrot.lane.b32.xlu1 %v992_v16, %s1344_s1 }
 0x272   :  { %v1133_v22 = vpop.eup %1132 }
 0x273   :  { %v403_v23 = vsub.f32 1.0, %v1133_v22  ;;  %v409_v25 = vmul.f32 %v1133_v22, %v1503_v14  ;;  %v571_v14 = vpack.c.bf16 %v1569_v31, %v1569_v31 }
 0x2bf   :  { %v284_v12 = vpop.permute.xlu1 %283 }
 0x2c0   :  { %v286_v15 = vmul.f32 %v284_v12, %v281_v11 }
 0x2c2   :  { %v1557_v18 = vadd.f32 %v291_v13, %v286_v15 }
 0x2c4   :  { %v299_v19 = vpack.c.bf16 %v1557_v18, %v1557_v18 }
 0x2c6   :  { %488 = vrot.lane.b32.xlu0 %v299_v19, %s1353_s0 }
 0x2ca   :  { %768 = vrot.lane.b32.xlu0 %v998_v21, %s1344_s1  ;;  %v1115_v21 = vld [vmem:[%s1661_s7 + $0x10] sm:$0xff]  }
 0x2d7   :  { %v406_v24 = vpop.permute.xlu1 %405 }
 0x2d8   :  { %v408_v26 = vmul.f32 %v406_v24, %v403_v23 }
 0x2da   :  { %v410_v27 = vadd.f32 %v409_v25, %v408_v26  ;;  %v1116_v25 = vld [vmem:[%s1661_s7 + $0x8] sm:$0xff]   ;;  %v1117_v26 = vld [vmem:[%s1661_s7 + $0x18] sm:$0xff]   ;;  %s1354_s7 = smov [#allocation14]  }
 0x2db   :  { %v647_v43 = vpop.permute.xlu1 %646  ;;  %s941_s5 = sshll.u32 %s1354_s7, 4  ;;  %s942_s5 = int_to_ptr.vmem [resolvable:$true] %s941_s5 }
 0x2dc   :  { %v413_v29 = vpack.c.bf16 %v410_v27, %v410_v27  ;;  %412 = vst.msk [vmem:[#allocation14 + $0x2] sm:$0x3] %vm297_vm4, %v410_v27  ;;  %p1287_p7 = scmp.lt.s32.totalorder %s942_s5, %s942_s5 }
 0x2de   :  { %982 = vmatmul.mubr.msk.bf16.vlgmr.msra.gmra.mrb[4].mxu1 %vm209_vm3, %v413_v29 }
 0x2df   :  { %1045 = vmatpush3.bf16.msra.mxu1 %v1104_v28  ;;  %1048 = vmatprep.mubr.msk.bf16.mxu1 %vm1352_vm0, %v1350_v0 }
 0x2e0   :  { %1046 = vmatprep.subr.bf16.mxu1 %v1350_v0 }
 0x2e3   :  { %1047 = vmatpush3.bf16.msra.mxu1 %v1105_v30 }
 0x2e4   :  { %1060 = vmatprep.subr.bf16.mxu1 %v1350_v0 }
 0x2e6   :  { %1049 = vmatmul.mubr.msk.bf16.vlgmr.msra.gmra.mrb[8].mxu1 %vm209_vm3, %v571_v14 }
 0x2e7   :  { %1064 = vmatprep.mubr.msk.bf16.mxu1 %vm1352_vm0, %v1350_v0  ;;  %1061 = vmatpush3.bf16.msra.mxu1 %v1115_v21 }
 0x2e8   :  { %1062 = vmatprep.subr.bf16.mxu1 %v1350_v0 }
 0x2eb   :  { %1063 = vmatpush3.bf16.msra.mxu1 %v1117_v26 }
 0x338   :  { %v489_v33 = vpop.permute.xlu0 %488 }
 0x339   :  { %987 = vmatmul.mubr.msk.bf16.vlgmr.msra.gmra.mrb[8].mxu0 %vm209_vm3, %v489_v33 }
 0x33a   :  { %1053 = vmatpush3.bf16.msra.mxu0 %v1112_v32  ;;  %1056 = vmatprep.mubr.msk.bf16.mxu0 %vm1352_vm0, %v1350_v0 }
 0x33b   :  { %1054 = vmatprep.subr.bf16.mxu0 %v1350_v0 }
 0x33c   :  { %v769_v62 = vpop.permute.xlu0 %768 }
 0x33e   :  { %1055 = vmatpush3.bf16.msra.mxu0 %v1113_v36 }
 0x33f   :  { %1068 = vmatprep.subr.bf16.mxu0 %v1350_v0 }
 0x341   :  { %1057 = vmatmul.mubr.msk.bf16.vlgmr.msra.gmra.mrb[12].mxu0 %vm209_vm3, %v682_v38 }
 0x342   :  { %1072 = vmatprep.mubr.msk.bf16.mxu0 %vm1352_vm0, %v1350_v0  ;;  %1069 = vmatpush3.bf16.msra.mxu0 %v1114_v20 }
 0x343   :  { %1070 = vmatprep.subr.bf16.mxu0 %v1350_v0 }
 0x346   :  { %1071 = vmatpush3.bf16.msra.mxu0 %v1116_v25 }
 0x3b1   :  { %v480_v39 = vpop.f32.mrb[4].mxu1 }
 0x3b2   :  { %v482_v40 = vpop.f32.mrb[5].mxu1 }
 0x3b3   :  { %v484_v41 = vpop.f32.mrb[6].mxu1 }
 0x3b4   :  { %v485_v42 = vpop.f32.mrb[7].mxu1 }
 0x3b9   :  { %v626_v44 = vpop.f32.mrb[8].mxu1 }
 0x3ba   :  { %v649_v45 = vadd.f32 %v647_v43, %v626_v44  ;;  %v1050_v46 = vpop.f32.mrb[9].mxu1 }
 0x3bb   :  { %v629_v47 = vpop.f32.mrb[10].mxu1 }
 0x3bc   :  { %v1051_v48 = vpop.f32.mrb[11].mxu1  ;;  %651 = vrot.lane.b32.xlu1 %v649_v45, %s1344_s1 }
 0x40c   :  { %v547_v51 = vpop.f32.mrb[8].mxu0 }
 0x40d   :  { %v548_v53 = vadd.f32 %v547_v51, %v480_v39  ;;  %v549_v54 = vpop.f32.mrb[9].mxu0 }
 0x40e   :  { %v550_v55 = vadd.f32 %v549_v54, %v482_v40  ;;  %v551_v56 = vpop.f32.mrb[10].mxu0 }
 0x40f   :  { %v567_v57 = vadd.f32 %v560_v50, %v548_v53  ;;  %v552_v58 = vpop.f32.mrb[11].mxu0 }
 0x410   :  { %v568_v60 = vadd.f32 %v564_v52, %v550_v55 }
 0x411   :  { %v632_v61 = vadd.f32 %v626_v44, %v567_v57 }
 0x413   :  { %v991_v63 = vmul.f32 -1.442695, %v632_v61 }
 0x414   :  { %v737_v1 = vpop.f32.mrb[12].mxu0 }
 0x415   :  { %1134 = vpow2.f32 %v991_v63  ;;  %744 = vrot.lane.b32.xlu0 %v737_v1, %s1353_s0  ;;  %v1058_v2 = vpop.f32.mrb[13].mxu0  ;;  %v771_v35 = vadd.f32 %v769_v62, %v737_v1 }
 0x416   :  { %v740_v3 = vpop.f32.mrb[14].mxu0 }
 0x417   :  { %v1059_v4 = vpop.f32.mrb[15].mxu0  ;;  %773 = vrot.lane.b32.xlu1 %v771_v35, %s1341_s14 }
 0x41f   :  { %v1135_v34 = vpop.eup %1134 }
 0x420   :  { %v636_v59 = vadd.f32 1.0, %v1135_v34 }
 0x422   :  { %1136 = vrcp.f32 %v636_v59 }
 0x42c   :  { %v1137_v5 = vpop.eup %1136 }
 0x42d   :  { %v661_v28 = vsub.f32 1.0, %v1137_v5 }
 0x42e   :  { %v652_v6 = vpop.permute.xlu1 %651 }
 0x42f   :  { %v654_v7 = vmul.f32 %v1137_v5, %v652_v6 }
 0x431   :  { %656 = vrot.lane.b32.xlu0 %v654_v7, %s1344_s1 }
 0x487   :  { %v745_v8 = vpop.permute.xlu0 %744 }
 0x488   :  { %v747_v9 = vadd.f32 %v745_v8, %v567_v57  ;;  %v754_v33 = vadd.f32 %v745_v8, %v568_v60 }
 0x489   :  { %v774_v15 = vpop.permute.xlu1 %773 }
 0x48a   :  { %v996_v10 = vmul.f32 -1.442695, %v747_v9  ;;  %v997_v36 = vmul.f32 -1.442695, %v754_v33 }
 0x48c   :  { %1138 = vpow2.f32 %v996_v10 }
 0x496   :  { %v1139_v11 = vpop.eup %1138 }
 0x497   :  { %v751_v12 = vadd.f32 1.0, %v1139_v11 }
 0x499   :  { %1140 = vrcp.f32 %v751_v12 }
 0x4a3   :  { %v1141_v13 = vpop.eup %1140  ;;  %v657_v16 = vpop.permute.xlu0 %656 }
 0x4a4   :  { %v776_v17 = vmul.f32 %v1141_v13, %v774_v15  ;;  %v659_v19 = vadd.f32 %v657_v16, %v567_v57 }
 0x4a6   :  { %1142 = vtanh.f32 %v659_v19  ;;  %778 = vrot.lane.b32.xlu1 %v776_v17, %s1344_s1 }
 0x4aa   :  { %668 = vrot.lane.b32.xlu1 %v1569_v31, %s1341_s14 }
 0x4b0   :  { %v1143_v22 = vpop.eup %1142 }
 0x4b1   :  { %663 = vrot.lane.b32.xlu0 %v1143_v22, %s1353_s0 }
 0x518   :  { %v779_v23 = vpop.permute.xlu1 %778 }
 0x519   :  { %v781_v24 = vadd.f32 %v779_v23, %v568_v60 }
 0x51b   :  { %1144 = vtanh.f32 %v781_v24 }
 0x51c   :  { %v669_v27 = vpop.permute.xlu1 %668  ;;  %1146 = vpow2.f32 %v997_v36 }
 0x51d   :  { %v671_v30 = vmul.f32 %v1137_v5, %v669_v27 }
 0x523   :  { %v664_v29 = vpop.permute.xlu0 %663 }
 0x524   :  { %v666_v31 = vmul.f32 %v664_v29, %v661_v28 }
 0x525   :  { %v1145_v14 = vpop.eup %1144 }
 0x526   :  { %v672_v0 = vadd.f32 %v671_v30, %v666_v31  ;;  %785 = vrot.lane.b32.xlu0 %v1145_v14, %s1353_s0  ;;  %v1147_v38 = vpop.eup %1146 }
 0x527   :  { %v758_v39 = vadd.f32 1.0, %v1147_v38 }
 0x528   :  { %v679_v32 = vpack.c.bf16 %v672_v0, %v672_v0 }
 0x529   :  { %1148 = vrcp.f32 %v758_v39 }
 0x52a   :  { %294 = vrot.lane.b32.xlu0 %v1557_v18, %s1353_s0  ;;  %859 = vrot.lane.b32.xlu1 %v679_v32, %s1353_s0 }
 0x52e   :  { %674 = vrot.lane.b32.xlu1 %v672_v0, %s1353_s0  ;;  %s1282_s0 = scalar_lea.vmem %s942_s5, 128 }
 0x52f   :  { %p1283_p6 = scmp.ne.s32.totalorder %s942_s5, %s1282_s0  ;;  %p1288_p8 = scmp.lt.s32.totalorder %s1282_s0, %s1282_s0 }
 0x531   :  { %p1289_p9 = por %p1288_p8, %p1287_p7 }
 0x533   :  { %v1149_v40 = vpop.eup %1148  ;;  %p1290_p10 = pnand %p1289_p9, %p1283_p6 }
 0x534   :  { %v783_v41 = vsub.f32 1.0, %v1149_v40  ;;  %v789_v43 = vmul.f32 %v1149_v40, %v1581_v37 }
 0x598   :  { %v786_v42 = vpop.permute.xlu0 %785 }
 0x599   :  { %v788_v44 = vmul.f32 %v786_v42, %v783_v41 }
 0x59b   :  { %v790_v45 = vadd.f32 %v789_v43, %v788_v44 }
 0x59c   :  { %v295_v46 = vpop.permute.xlu0 %294  ;;  %v860_v47 = vpop.permute.xlu1 %859 }
 0x59d   :  { %v793_v18 = vpack.c.bf16 %v790_v45, %v790_v45  ;;  %298 = vst.msk [vmem:[#allocation14] sm:$0x3] %vm297_vm4, %v295_v46  ;;  %792 = vst.msk [vmem:[#allocation14 + $0x6] sm:$0x3] %vm297_vm4, %v790_v45  ;;  %1073 = vmatmul.mubr.msk.bf16.vlgmr.msra.gmra.mrb[16].mxu0 %vm209_vm3, %v860_v47 }
 0x59f   :  { %1065 = vmatmul.mubr.msk.bf16.vlgmr.msra.gmra.mrb[12].mxu1 %vm209_vm3, %v793_v18 }
 0x5a0   :  { %v675_v48 = vpop.permute.xlu1 %674 }
 0x5a1   :  { %678 = vst.msk [vmem:[#allocation14 + $0x4] sm:$0x3] %vm297_vm4, %v675_v48 }
 0x5a2   :  { %1293 = shalt.err (!%p1290_p10)
}
 0x5a3   :  { %s1294_s12 = scalar_lea.hbm %s1664_s10, 128 }
 0x5a4   :  { %p1295_p11 = scmp.ne.s32.totalorder %s1664_s10, %s1294_s12  ;;  %p1298_p12 = scmp.lt.u32.totalorder %s1294_s12, %s1664_s10 }
 0x5a6   :  { %p1300_p13 = pnand %p1298_p12, %p1295_p11 }
 0x5a8   :  { %1303 = shalt.err (!%p1300_p13)
}
 0x5a9   :  { %947 = dma.vmem_to_hbm [thread:$0]  %s942_s5, 128, %s1664_s10, [#allocation15], %s1341_s14, %s1341_s14, %s1342_s17   ;;  %v1009_v51 = vld [vmem:[#allocation11] ss:$0 sm:$0xff]  ;;  %vm924_vm5 = vcmask 25600  }
 0x5aa   :  { %s1355_s18 = smov [#allocation13]  }
 0x5ab   :  { %s932_s19 = sshll.u32 %s1355_s18, 4  ;;  %s933_s19 = int_to_ptr.vmem [resolvable:$true] %s932_s19 }
 0x5ac   :  { %s1304_s20 = scalar_lea.vmem %s933_s19, 32  ;;  %p1309_p1 = scmp.lt.s32.totalorder %s933_s19, %s933_s19 }
 0x5ad   :  { %p1305_p0 = scmp.ne.s32.totalorder %s933_s19, %s1304_s20  ;;  %p1310_p2 = scmp.lt.s32.totalorder %s1304_s20, %s1304_s20 }
 0x5af   :  { %p1311_p3 = por %p1310_p2, %p1309_p1 }
 0x5b1   :  { %p1312_p4 = pnand %p1311_p3, %p1305_p0 }
 0x670   :  { %v910_v37 = vpop.f32.mrb[16].mxu0 }
 0x671   :  { %v1074_v49 = vpop.f32.mrb[17].mxu0 }
 0x672   :  { %v852_v50 = vpop.f32.mrb[12].mxu1  ;;  %v913_v52 = vpop.f32.mrb[18].mxu0 }
 0x673   :  { %v911_v53 = vadd.f32 %v910_v37, %v852_v50  ;;  %v1066_v54 = vpop.f32.mrb[13].mxu1  ;;  %v1075_v55 = vpop.f32.mrb[19].mxu0 }
 0x674   :  { %v855_v56 = vpop.f32.mrb[14].mxu1 }
 0x675   :  { %v923_v57 = vadd.f32 %v1009_v51, %v911_v53  ;;  %v1067_v58 = vpop.f32.mrb[15].mxu1 }
 0x677   :  { %925 = vst.msk [vmem:[#allocation13] sm:$0x3] %vm924_vm5, %v923_v57 }
 0x678   :  { %1315 = shalt.err (!%p1312_p4)
}
 0x679   :  { %s1316_s17 = scalar_lea.hbm %s1663_s9, 32 }
 0x67a   :  { %p1317_p5 = scmp.ne.s32.totalorder %s1663_s9, %s1316_s17  ;;  %p1320_p6 = scmp.lt.u32.totalorder %s1316_s17, %s1663_s9 }
 0x67c   :  { %p1322_p7 = pnand %p1320_p6, %p1317_p5 }
 0x67e   :  { %1325 = shalt.err (!%p1322_p7)
}
 0x67f   :  { %935 = dma.vmem_to_hbm [thread:$0]  %s933_s19, 32, %s1663_s9, [#allocation4]  }
 0x680   :  { %1334 = dma.done.wait [#allocation4], 32  }
 0x681   :  { %1335 = vsyncadd [#allocation4], 4294967264 }
 0x682   :  { %1336 = dma.done.wait [#allocation15], 128  }
 0x683   :  { %1337 = vsyncadd [#allocation15], 4294967168 }
 0x684   :  { %954 = vsyncpa [#allocation3], 1 }
 0x685   :  { %955 = vsyncpa [#allocation6], 1 }
 0x686   :  { %956 = vsyncpa [#allocation9], 1 }
 0x687   :  { %957 = vsyncpa [#allocation12], 1 }
 0x688   :  { %958 = vsyncpa [#allocation4], 1 }
 0x689   :  { %959 = vsyncpa [#allocation15], 1 }

</bundles_post_ra>
